<compile_context>
chip_gen: v5e
topology: v5e:2x2
jax: 0.10.0
libtpu: 0.0.40
codegen_flags: <defaults>
</compile_context>

<pallas_src>
import functools

import jax
import jax.numpy as jnp
from jax.experimental import pallas as pl
from jax.experimental.pallas import tpu as pltpu

D_IN, H1, H2, D_OUT = 10, 50, 20, 1
LANE = 128


def mlp_kernel(x_ref, w_ref, c_ref, o_ref):
    """Fused MLP on one (D_IN, TB) feature-major batch tile.

    w_ref: (70, 50) slab -> rows 0:50 = w1 (cols 0:10), rows 50:70 = w2.
    c_ref: (91, 1) slab  -> b1 | b2 | b3 | w3^T stacked along sublanes.
    """
    x = x_ref[...]                                                    # (10, TB)

    w1 = w_ref[0:H1, 0:D_IN]                                          # (50, 10)
    w2 = w_ref[H1:H1 + H2, 0:H1]                                      # (20, 50)
    b1 = c_ref[0:H1, :]                                               # (50, 1)
    b2 = c_ref[H1:H1 + H2, :]                                         # (20, 1)
    b3 = c_ref[H1 + H2:H1 + H2 + 1, :]                                # (1, 1)
    w3t = c_ref[H1 + H2 + 1:H1 + H2 + 1 + H2, :]                      # (20, 1)

    h1 = jnp.dot(w1, x, preferred_element_type=jnp.float32) + b1
    h1 = jnp.maximum(h1, 0.0)                                         # (50, TB)

    h2 = jnp.dot(w2, h1, preferred_element_type=jnp.float32) + b2
    h2 = jnp.maximum(h2, 0.0)                                         # (20, TB)

    # Layer 3 has M=1: a (1,20)x(20,TB) dot wastes a full MXU pass, so do it on
    # the VPU (broadcast multiply) + XLU (sublane reduction) instead.
    h3 = jnp.sum(w3t * h2, axis=0, keepdims=True) + b3                # (1, TB)
    o_ref[...] = h3.astype(o_ref.dtype)


def _choose_tb(batch, *, tb_target=16384, min_steps=4):
    """Pick a lane-aligned batch tile.

    Big enough to amortize per-grid-step overhead, but (a) fits v5e's 16 MiB
    scoped VMEM at the default target, (b) leaves >= min_steps grid steps so
    v7x's two TensorCores split the 'parallel' axis, (c) keeps zero-pad waste
    under ~10% of the real batch.
    """
    tb_target = max(LANE, (tb_target // LANE) * LANE)
    b_aligned = max(LANE, pl.cdiv(batch, LANE) * LANE)
    tb = min(tb_target, b_aligned)
    if b_aligned >= min_steps * LANE:
        tb = min(tb, ((b_aligned // min_steps) // LANE) * LANE)
    tb = max(tb, LANE)
    while tb > LANE and (pl.cdiv(batch, tb) * tb - batch) > max(batch // 10, LANE):
        tb -= LANE
    return tb


@functools.partial(jax.jit, static_argnames=("tb_target",))
def simple_model_forward(x, params, *, tb_target=16384):
    """x: (B, 10) float32 -> (B, 1) float32 (PyTorch y = x @ W^T + b convention)."""
    w1, b1, w2, b2, w3, b3 = params
    B = x.shape[0]

    tb = _choose_tb(B, tb_target=tb_target)
    b_pad = pl.cdiv(B, tb) * tb

    # Pad + feature-major transpose stay in this jit region so XLA emits a
    # single copy feeding the kernel (batch lands on the 128-lane axis).
    if b_pad != B:
        x = jnp.pad(x, ((0, b_pad - B), (0, 0)))
    x_t = x.T                                                         # (10, b_pad)

    # Pack the six parameters into two resident VMEM slabs (3 input DMAs, not 7).
    w_slab = jnp.concatenate(
        [jnp.pad(w1, ((0, 0), (0, H1 - D_IN))), w2], axis=0)          # (70, 50)
    c_slab = jnp.concatenate([b1, b2, b3, w3.T], axis=0)              # (91, 1)

    grid = (b_pad // tb,)
    cost = pl.CostEstimate(
        flops=b_pad * (2 * D_IN * H1 + 2 * H1 * H2 + 2 * H2),
        transcendentals=0,
        bytes_accessed=4 * b_pad * (D_IN + D_OUT)
        + 4 * (int(w_slab.size) + int(c_slab.size)),
    )

    out_t = pl.pallas_call(
        mlp_kernel,
        out_shape=jax.ShapeDtypeStruct((D_OUT, b_pad), jnp.float32),
        grid=grid,
        in_specs=[
            pl.BlockSpec((D_IN, tb), lambda i: (0, i)),    # x tile: batch on lanes
            pl.BlockSpec(w_slab.shape, lambda i: (0, 0)),  # resident weight slab
            pl.BlockSpec(c_slab.shape, lambda i: (0, 0)),  # resident bias/w3^T slab
        ],
        out_specs=pl.BlockSpec((D_OUT, tb), lambda i: (0, i)),
        compiler_params=pltpu.CompilerParams(dimension_semantics=("parallel",)),
        cost_estimate=cost,
    )(x_t, w_slab, c_slab)

    return out_t[:, :B].T                                             # (B, 1)


def init_params(key):
    """Deterministic init matching nn.Linear (PyTorch-native (out, in) weights)."""
    ks = jax.random.split(key, 6)

    def linear(kw, kb, fan_in, fan_out):
        bound = 1.0 / jnp.sqrt(fan_in)
        w = jax.random.uniform(kw, (fan_out, fan_in), jnp.float32, -bound, bound)
        b = jax.random.uniform(kb, (fan_out, 1), jnp.float32, -bound, bound)
        return w, b

    w1, b1 = linear(ks[0], ks[1], D_IN, H1)
    w2, b2 = linear(ks[2], ks[3], H1, H2)
    w3, b3 = linear(ks[4], ks[5], H2, D_OUT)
    return (w1, b1, w2, b2, w3, b3)


if __name__ == "__main__":
    key = jax.random.PRNGKey(0)
    kx, kp = jax.random.split(key)

    B = 8
    x = jax.random.normal(kx, (B, D_IN), dtype=jnp.float32)
    params = init_params(kp)

    out = simple_model_forward(x, params)
    out = jax.block_until_ready(out)

    # Pure-JAX reference (PyTorch convention y = x @ W^T + b).  Kernel's layers
    # 1-2 go through the bf16 MXU at DEFAULT precision and layer 3 through the
    # f32 VPU, so allow ~1e-2 absolute tolerance.
    w1, b1, w2, b2, w3, b3 = params
    ref = jnp.maximum(x @ w1.T + b1.T, 0.0)
    ref = jnp.maximum(ref @ w2.T + b2.T, 0.0)
    ref = ref @ w3.T + b3.T

    assert out.shape == (B, D_OUT), f"bad output shape {out.shape}"
    assert jnp.allclose(out, ref, atol=1e-2), (
        f"mismatch vs reference, max abs diff = {jnp.max(jnp.abs(out - ref))}")

    print("KERNEL_OK")
</pallas_src>

<mosaic_0001>
module attributes {stable_mosaic.version = 11 : i64} {
  func.func @mlp_kernel(%arg0: i32, %arg1: memref<10x128xf32, #tpu.memory_space<vmem>>, %arg2: memref<70x50xf32, #tpu.memory_space<vmem>>, %arg3: memref<91x1xf32, #tpu.memory_space<vmem>>, %arg4: memref<1x128xf32, #tpu.memory_space<vmem>>) attributes {dimension_semantics = [#tpu.dimension_semantics<parallel>], iteration_bounds = array<i64: 1>, scalar_prefetch = 0 : i64, scratch_operands = 0 : i64, tpu.core_type = #tpu.core_type<tc>, window_params = [{transform_indices = @transform_0, window_bounds = array<i64: 10, 128>}, {pipeline_mode = #tpu.pipeline_mode<synchronous>, transform_indices = @transform_1, window_bounds = array<i64: 70, 50>}, {pipeline_mode = #tpu.pipeline_mode<synchronous>, transform_indices = @transform_2, window_bounds = array<i64: 91, 1>}, {transform_indices = @transform_3, window_bounds = array<i64: 1, 128>}]} {
    %c0 = arith.constant 0 : index
    %c0_0 = arith.constant 0 : index
    %0 = vector.load %arg1[%c0, %c0_0] : memref<10x128xf32, #tpu.memory_space<vmem>>, vector<10x128xf32>
    %c0_1 = arith.constant 0 : index
    %c0_2 = arith.constant 0 : index
    %1 = vector.load %arg2[%c0_1, %c0_2] : memref<70x50xf32, #tpu.memory_space<vmem>>, vector<50x10xf32>
    %c50 = arith.constant 50 : index
    %c0_3 = arith.constant 0 : index
    %2 = vector.load %arg2[%c50, %c0_3] : memref<70x50xf32, #tpu.memory_space<vmem>>, vector<20x50xf32>
    %c0_4 = arith.constant 0 : index
    %c0_5 = arith.constant 0 : index
    %3 = vector.load %arg3[%c0_4, %c0_5] : memref<91x1xf32, #tpu.memory_space<vmem>>, vector<50x1xf32>
    %c50_6 = arith.constant 50 : index
    %c0_7 = arith.constant 0 : index
    %4 = vector.load %arg3[%c50_6, %c0_7] : memref<91x1xf32, #tpu.memory_space<vmem>>, vector<20x1xf32>
    %c70 = arith.constant 70 : index
    %c0_8 = arith.constant 0 : index
    %5 = vector.load %arg3[%c70, %c0_8] : memref<91x1xf32, #tpu.memory_space<vmem>>, vector<1x1xf32>
    %c71 = arith.constant 71 : index
    %c0_9 = arith.constant 0 : index
    %6 = vector.load %arg3[%c71, %c0_9] : memref<91x1xf32, #tpu.memory_space<vmem>>, vector<20x1xf32>
    %cst = arith.constant dense<0.000000e+00> : vector<50x128xf32>
    %7 = tpu.matmul %1, %0, %cst {dimension_numbers = #tpu.dot_dimension_numbers<[1], [0], [0], [1], [0, 0, 1, 1], [], []>} : vector<50x10xf32>, vector<10x128xf32>, vector<50x128xf32> -> vector<50x128xf32>
    %8 = vector.broadcast %3 : vector<50x1xf32> to vector<50x128xf32>
    %9 = arith.addf %7, %8 : vector<50x128xf32>
    %cst_10 = arith.constant 0.000000e+00 : f32
    %10 = vector.broadcast %cst_10 : f32 to vector<50x128xf32>
    %11 = arith.maximumf %9, %10 : vector<50x128xf32>
    %cst_11 = arith.constant dense<0.000000e+00> : vector<20x128xf32>
    %12 = tpu.matmul %2, %11, %cst_11 {dimension_numbers = #tpu.dot_dimension_numbers<[1], [0], [0], [1], [0, 0, 1, 1], [], []>} : vector<20x50xf32>, vector<50x128xf32>, vector<20x128xf32> -> vector<20x128xf32>
    %13 = vector.broadcast %4 : vector<20x1xf32> to vector<20x128xf32>
    %14 = arith.addf %12, %13 : vector<20x128xf32>
    %cst_12 = arith.constant 0.000000e+00 : f32
    %15 = vector.broadcast %cst_12 : f32 to vector<20x128xf32>
    %16 = arith.maximumf %14, %15 : vector<20x128xf32>
    %17 = vector.broadcast %6 : vector<20x1xf32> to vector<20x128xf32>
    %18 = arith.mulf %17, %16 : vector<20x128xf32>
    %cst_13 = arith.constant dense<0.000000e+00> : vector<128xf32>
    %19 = vector.multi_reduction <add>, %18, %cst_13 [0] : vector<20x128xf32> to vector<128xf32>
    %20 = vector.shape_cast %19 : vector<128xf32> to vector<1x128xf32>
    %21 = vector.broadcast %5 : vector<1x1xf32> to vector<1x128xf32>
    %22 = arith.addf %20, %21 : vector<1x128xf32>
    %c0_14 = arith.constant 0 : index
    %c0_15 = arith.constant 0 : index
    %23 = vector.load %arg4[%c0_14, %c0_15] : memref<1x128xf32, #tpu.memory_space<vmem>>, vector<1x128xf32>
    tpu.vector_store %arg4[%c0_14, %c0_15], %22 {strides = array<i32>} : memref<1x128xf32, #tpu.memory_space<vmem>>, vector<1x128xf32>,
    return
  }
  func.func @transform_0(%arg0: i32) -> (i32, i32) {
    %c0_i32 = arith.constant 0 : i32
    %c0_i32_0 = arith.constant 0 : i32
    return %c0_i32, %arg0 : i32, i32
  }
  func.func @transform_1(%arg0: i32) -> (i32, i32) {
    %c0_i32 = arith.constant 0 : i32
    %c0_i32_0 = arith.constant 0 : i32
    %c0_i32_1 = arith.constant 0 : i32
    return %c0_i32, %c0_i32_0 : i32, i32
  }
  func.func @transform_2(%arg0: i32) -> (i32, i32) {
    %c0_i32 = arith.constant 0 : i32
    %c0_i32_0 = arith.constant 0 : i32
    %c0_i32_1 = arith.constant 0 : i32
    return %c0_i32, %c0_i32_0 : i32, i32
  }
  func.func @transform_3(%arg0: i32) -> (i32, i32) {
    %c0_i32 = arith.constant 0 : i32
    %c0_i32_0 = arith.constant 0 : i32
    return %c0_i32, %arg0 : i32, i32
  }
}

</mosaic_0001>

<bundles_post_ra>
// kernel: simple_model_forward.1
= control target key start
LH: loop header
LB: loop body
LE: loop exit
PB: predicated region body
PF: predicated region fallthrough
CT: control target
= control target key end

     0   :  { %vm97_vm0 = vcmask 1041408   ;;  %v267_v2 = vmov 0   ;;  %vm75_vm1 = vcmask 80896   ;;  %vm161_vm2 = vcmask 408576   ;;  %s380_s0 = inlined_call_operand.vmem [shape: f32[10,128], index: 0, kind: input, shape index: {}]   ;;  %s381_s1 = inlined_call_operand.vmem [shape: f32[70,50], index: 1, kind: input, shape index: {}]   ;;  %s382_s2 = inlined_call_operand.vmem [shape: f32[91,1], index: 2, kind: input, shape index: {}]   ;;  %s383_s3 = inlined_call_operand.vmem [shape: f32[1,128], index: 3, kind: output, shape index: {}]  }
   0x1   :  { %v15_v0 = vld [vmem:[%s380_s0 + $0x8] sm:$0x3]  ;;  %v14_v1 = vld [vmem:[%s380_s0] sm:$0xff]  ;;  %264 = vset.pattern.permute.xlu0 %v267_v2  ;;  %265 = vset.pattern.permute.xlu1 %v267_v2  ;;  %v19_v3 = vld [vmem:[%s381_s1 + $0x18] sm:$0xff]  ;;  %vm222_vm3 = vcmask 1043456  }
   0x2   :  { %254 = vmatpush.msk.msra.mxu2 %vm97_vm0, %v15_v0  ;;  %v32_v4 = vld [vmem:[%s382_s2 + $0x30] sm:$0x3]  ;;  %v30_v5 = vld [vmem:[%s382_s2 + $0x20] sm:$0xff]  ;;  %242 = vmatpush.msk.msra.mxu0 %vm97_vm0, %v15_v0  ;;  %v31_v8 = vld [vmem:[%s382_s2 + $0x28] sm:$0xff] }
   0x3   :  { %72 = vperm.xlu0 %264, %v32_v4   ;;  %62 = vperm.xlu1 %265, %v30_v5   ;;  %v16_v6 = vld [vmem:[%s381_s1] sm:$0xff]  ;;  %v28_v7 = vld [vmem:[%s382_s2 + $0x10] sm:$0xff]  ;;  %v29_v9 = vld [vmem:[%s382_s2 + $0x18] sm:$0xff] }
   0x4   :  { %255 = vmatpush.msra.mxu2 %v14_v1  ;;  %116 = vmatpush.msra.mxu0 %v14_v1  ;;  %v20_v10 = vld [vmem:[%s381_s1 + $0x20] sm:$0xff]  ;;  %v17_v11 = vld [vmem:[%s381_s1 + $0x8] sm:$0xff]  ;;  %v33_v14 = vld [vmem:[%s382_s2 + $0x32] sm:$0xff] }
   0x5   :  { %246 = vmatmul.msk.f32.vlgmr.msra.gmra.mxu2 %vm75_vm1, %v19_v3  ;;  %243 = vmatmul.msk.f32.vlgmr.msra.gmra.mxu0 %vm75_vm1, %v16_v6  ;;  %v27_v12 = vld [vmem:[%s382_s2 + $0x8] sm:$0xff]  ;;  %v26_v13 = vld [vmem:[%s382_s2] sm:$0xff]  ;;  %v18_v16 = vld [vmem:[%s381_s1 + $0x10] sm:$0xff] }
   0x6   :  { %266 = vset.pattern.permute.xlu2 %v267_v2  ;;  %v21_v15 = vld [vmem:[%s381_s1 + $0x28] sm:$0xff]  ;;  %v34_v17 = vld [vmem:[%s382_s2 + $0x3a] sm:$0xff]  ;;  %v35_v18 = vld [vmem:[%s382_s2 + $0x42] sm:$0xf] }
   0x7   :  { %52 = vperm.xlu2 %266, %v28_v7   ;;  %v37_v19 = vld [vmem:[%s382_s2 + $0x47] sm:$0xff]  ;;  %v22_v20 = vld [vmem:[%s381_s1 + $0x30] sm:$0x3]  ;;  %v39_v22 = vld [vmem:[%s382_s2 + $0x57] sm:$0xf] }
   0x8   :  { %v38_v21 = vld [vmem:[%s382_s2 + $0x4f] sm:$0xff]  ;;  %v36_v23 = vld [vmem:[%s382_s2 + $0x46] sm:$0x1]  ;;  %v24_v53 = vld [vmem:[%s381_s1 + $0x3a] sm:$0xff] }
   0x9   :  { %v23_v52 = vld [vmem:[%s381_s1 + $0x32] sm:$0xff]  ;;  %v25_v54 = vld [vmem:[%s381_s1 + $0x42] sm:$0xf] }
   0xb   :  { %67 = vperm.xlu0 %264, %v31_v8   ;;  %57 = vperm.xlu1 %265, %v29_v9  }
   0xd   :  { %247 = vmatmul.msk.f32.gmra.mxu2 %vm75_vm1, %v20_v10  ;;  %244 = vmatmul.msk.f32.gmra.mxu0 %vm75_vm1, %v17_v11 }
   0xf   :  { %47 = vperm.xlu2 %266, %v27_v12  }
  0x13   :  { %42 = vperm.xlu0 %264, %v26_v13   ;;  %148 = vperm.xlu1 %265, %v33_v14  }
  0x15   :  { %248 = vmatmul.msk.f32.gmra.mxu2 %vm75_vm1, %v21_v15  ;;  %245 = vmatmul.msk.f32.gmra.mxu0 %vm75_vm1, %v18_v16 }
  0x17   :  { %153 = vperm.xlu2 %266, %v34_v17  }
  0x1b   :  { %158 = vperm.xlu0 %264, %v35_v18   ;;  %205 = vperm.xlu1 %265, %v37_v19  }
  0x1d   :  { %249 = vmatmul.msk.f32.gmra.mxu2 %vm75_vm1, %v22_v20 }
  0x1f   :  { %210 = vperm.xlu2 %266, %v38_v21  }
  0x23   :  { %215 = vperm.xlu0 %264, %v39_v22   ;;  %233 = vperm.xlu1 %265, %v36_v23  }
  0x61   :  { %v53_v31 = vpop.permute.xlu2 %52 }
  0x69   :  { %v48_v44 = vpop.permute.xlu2 %47 }
  0x71   :  { %v154_v55 = vpop.permute.xlu2 %153 }
  0x75   :  { %v73_v27 = vpop.permute.xlu0 %72  ;;  %v63_v29 = vpop.permute.xlu1 %62 }
  0x79   :  { %v211_v1 = vpop.permute.xlu2 %210 }
  0x7d   :  { %v68_v32 = vpop.permute.xlu0 %67  ;;  %v58_v38 = vpop.permute.xlu1 %57 }
  0x82   :  { %v118_v26 = vpop.f32.mrf.mxu0 }
  0x85   :  { %v43_v47 = vpop.permute.xlu0 %42  ;;  %v149_v57 = vpop.permute.xlu1 %148 }
  0x86   :  { %v119_v48 = vadd.f32 %v118_v26, %v43_v47 }
  0x88   :  { %v127_v24 = vpop.f32.mrf.mxu2  ;;  %v139_v51 = vmax.f32 %v119_v48, 0.0 }
  0x89   :  { %v128_v40 = vadd.f32 %v127_v24, %v58_v38 }
  0x8a   :  { %v121_v30 = vpop.f32.mrf.mxu0 }
  0x8b   :  { %v142_v45 = vmax.f32 %v128_v40, 0.0  ;;  %v122_v46 = vadd.f32 %v121_v30, %v48_v44 }
  0x8d   :  { %v140_v50 = vmax.f32 %v122_v46, 0.0  ;;  %v159_v59 = vpop.permute.xlu0 %158  ;;  %v206_v4 = vpop.permute.xlu1 %205 }
  0x90   :  { %v130_v25 = vpop.f32.mrf.mxu2 }
  0x91   :  { %v131_v36 = vadd.f32 %v130_v25, %v63_v29 }
  0x92   :  { %v124_v39 = vpop.f32.mrf.mxu0 }
  0x93   :  { %v143_v42 = vmax.f32 %v131_v36, 0.0  ;;  %v125_v43 = vadd.f32 %v124_v39, %v53_v31 }
  0x95   :  { %v141_v49 = vmax.f32 %v125_v43, 0.0  ;;  %v216_v6 = vpop.permute.xlu0 %215  ;;  %v234_v18 = vpop.permute.xlu1 %233 }
  0x98   :  { %v133_v28 = vpop.f32.mrf.mxu2 }
  0x99   :  { %v134_v34 = vadd.f32 %v133_v28, %v68_v32 }
  0x9b   :  { %v144_v41 = vmax.f32 %v134_v34, 0.0 }
  0xa0   :  { %v136_v33 = vpop.f32.mrf.mxu2 }
  0xa1   :  { %v137_v35 = vadd.f32 %v136_v33, %v73_v27 }
  0xa3   :  { %v145_v37 = vmax.f32 %v137_v35, 0.0 }
  0xa5   :  { %250 = vmatpush.msk.msra.mxu1 %vm97_vm0, %v145_v37  ;;  %256 = vmatpush.msk.msra.mxu3 %vm97_vm0, %v145_v37 }
  0xa7   :  { %184 = vmatpush.msra.mxu1 %v144_v41  ;;  %257 = vmatpush.msra.mxu3 %v144_v41 }
  0xa9   :  { %185 = vmatpush.msra.mxu1 %v143_v42  ;;  %258 = vmatpush.msra.mxu3 %v143_v42 }
  0xab   :  { %186 = vmatpush.msra.mxu1 %v142_v45  ;;  %259 = vmatpush.msra.mxu3 %v142_v45 }
  0xad   :  { %187 = vmatpush.msra.mxu1 %v141_v49  ;;  %260 = vmatpush.msra.mxu3 %v141_v49 }
  0xaf   :  { %188 = vmatpush.msra.mxu1 %v140_v50  ;;  %261 = vmatpush.msra.mxu3 %v140_v50 }
  0xb1   :  { %189 = vmatpush.msra.mxu1 %v139_v51  ;;  %262 = vmatpush.msra.mxu3 %v139_v51 }
  0xb2   :  { %251 = vmatmul.msk.f32.vlgmr.msra.gmra.mxu1 %vm161_vm2, %v23_v52  ;;  %252 = vmatmul.msk.f32.vlgmr.msra.gmra.mxu3 %vm161_vm2, %v24_v53 }
  0xba   :  { %253 = vmatmul.msk.f32.gmra.mxu3 %vm161_vm2, %v25_v54 }
 0x12f   :  { %v191_v58 = vpop.f32.mrf.mxu1 }
 0x130   :  { %v192_v61 = vadd.f32 %v191_v58, %v149_v57 }
 0x132   :  { %v200_v63 = vmax.f32 %v192_v61, 0.0 }
 0x134   :  { %v218_v7 = vmul.f32 %v206_v4, %v200_v63 }
 0x135   :  { %v194_v56 = vpop.f32.mrf.mxu3 }
 0x136   :  { %v195_v60 = vadd.f32 %v194_v56, %v154_v55 }
 0x138   :  { %v201_v62 = vmax.f32 %v195_v60, 0.0 }
 0x13a   :  { %v219_v3 = vmul.f32 %v211_v1, %v201_v62 }
 0x13c   :  { %v221_v9 = vadd.f32 %v219_v3, %v218_v7 }
 0x13d   :  { %v197_v0 = vpop.f32.mrf.mxu3 }
 0x13e   :  { %v198_v2 = vadd.f32 %v197_v0, %v159_v59 }
 0x140   :  { %v202_v5 = vmax.f32 %v198_v2, 0.0 }
 0x142   :  { %v220_v8 = vmul.f32 %v216_v6, %v202_v5 }
 0x144   :  { %v223_v10 = vsel %vm222_vm3, %v220_v8, 0.0 }
 0x145   :  { %v224_v11 = vadd.f32 %v223_v10, %v221_v9 }
 0x147   :  { %v225_v12 = vrot.slane %v224_v11, 4 }
 0x149   :  { %v226_v13 = vadd.f32 %v225_v12, %v224_v11 }
 0x14b   :  { %v227_v14 = vrot.slane %v226_v13, 2 }
 0x14d   :  { %v228_v15 = vadd.f32 %v227_v14, %v226_v13 }
 0x14f   :  { %v229_v16 = vrot.slane %v228_v15, 1 }
 0x151   :  { %v230_v17 = vadd.f32 %v229_v16, %v228_v15 }
 0x153   :  { %v236_v19 = vadd.f32 %v234_v18, %v230_v17 }
 0x155   :  { %237 = vst [vmem:[%s383_s3] sm:$0x1] %v236_v19 }

</bundles_post_ra>
